<compile_context>
chip_gen: v7x
topology: tpu7x:2x2x1
jax: 0.10.0
libtpu: 0.0.40
codegen_flags: <defaults>
</compile_context>

<pallas_src>
import numpy as np

import jax
import jax.numpy as jnp
from jax import lax
from jax.experimental import pallas as pl
from jax.experimental.pallas import tpu as pltpu


# ----------------------------------------------------------------------------
# Pallas kernel: wavefront (level-by-level) TreeLSTM.
#
# Padded wavefront layout: L levels, each padded to W rows (W % 8 == 0).
#   row = l * W + w  for the w-th node of level l; dummy rows are padded slots.
#   row L*W is the shared "zero" row (missing child).
#   left_row / right_row give each row's child rows (or L*W).
#
# State layout: state[row] = [ h (Hs lanes) | c (Hs lanes) ], f32.
# Gate layout:  gate g of ioffu/xp lives in lanes [g*Hs, g*Hs + H); px occupies
#               the last Hs lanes of the fused 7*Hs x-projection.
# ----------------------------------------------------------------------------
def _tree_lstm_wavefront_kernel(
    left_row_ref, right_row_ref,   # SMEM int32 [L*W]
    feats_ref,                     # VMEM [L*W, Fp]           (compute dtype)
    w_xcomb_ref,                   # VMEM [Fp, 7*Hs]          (compute dtype)  [ioffu_x | px]
    b_xcomb_ref,                   # VMEM [1, 7*Hs]           f32 (combined biases)
    w_h_ref,                       # VMEM [4*Hs, 6*Hs]        (compute dtype)  [w_hl; 0; w_hr; 0]
    state_ref,                     # VMEM out [L*W + 1, 2*Hs] f32, [h | c] history; row L*W = zeros
    xp_ref,                        # VMEM scratch [L, W, 7*Hs] (compute dtype)
):
    L, W, lanes7 = xp_ref.shape
    Hs = lanes7 // 7
    LW = L * W

    # Zero row for missing children (row LW), read by the leaf level.
    state_ref[pl.ds(LW, 1), :] = jnp.zeros((1, 2 * Hs), jnp.float32)

    # Hoisted x-dependent matmul for all nodes at once (fused px | ioffu_x),
    # stored per level so the serial loop only does lane-dense slab loads.
    y = (
        jnp.dot(feats_ref[...], w_xcomb_ref[...], preferred_element_type=jnp.float32)
        + b_xcomb_ref[...]
    )
    for l in range(L):  # static unroll: one unmasked slab store per level
        xp_ref[l] = y[l * W:(l + 1) * W, :].astype(xp_ref.dtype)

    def level_body(l, carry):
        base = pl.multiple_of(l * W, 8)

        # Hoist the level's scalar child-index reads (SMEM).
        idx = [(left_row_ref[base + w], right_row_ref[base + w]) for w in range(W)]

        # Gather children's fused [h | c] rows (one dynamic row load per child)
        # and assemble the level blocks as register values (no scratch stores).
        lrows = jnp.concatenate(
            [state_ref[pl.ds(ls, 1), :] for ls, _ in idx], axis=0)   # (W, 2*Hs)
        rrows = jnp.concatenate(
            [state_ref[pl.ds(rs, 1), :] for _, rs in idx], axis=0)   # (W, 2*Hs)
        left_c = lrows[:, Hs:2 * Hs]
        right_c = rrows[:, Hs:2 * Hs]

        # One fused recurrent matmul for the whole level: LHS = [h_l|c_l|h_r|c_r]
        # (vreg-aligned concat); the weight's c-rows are zero.
        lhs = jnp.concatenate([lrows, rrows], axis=1)                # (W, 4*Hs)
        xp = xp_ref[l].astype(jnp.float32)                           # (W, 7*Hs)
        ioffu = (
            jnp.dot(lhs.astype(w_h_ref.dtype), w_h_ref[...],
                    preferred_element_type=jnp.float32)
            + xp[:, 0:6 * Hs]
        )
        px = xp[:, 6 * Hs:7 * Hs]

        i_g = jax.nn.sigmoid(ioffu[:, 0 * Hs:1 * Hs])
        o_g = jax.nn.sigmoid(ioffu[:, 1 * Hs:2 * Hs])
        f_l = jax.nn.sigmoid(ioffu[:, 2 * Hs:3 * Hs])
        f_r = jax.nn.sigmoid(ioffu[:, 3 * Hs:4 * Hs])
        u_g = jnp.tanh(ioffu[:, 4 * Hs:5 * Hs])
        r_g = jax.nn.sigmoid(ioffu[:, 5 * Hs:6 * Hs])

        c = i_g * u_g + f_l * left_c + f_r * right_c
        h = o_g * jnp.tanh(c)
        h_final = px + r_g * (h - px)        # == r*h + (1-r)*px
        # eval mode: no dropout mask applied.

        # Single unmasked (W, 2*Hs) store writes the level's h and c together.
        state_ref[pl.ds(base, W), :] = jnp.concatenate([h_final, c], axis=1)
        return carry

    lax.fori_loop(0, L, level_body, 0)


# ----------------------------------------------------------------------------
# Host-side schedule construction: post-order schedule -> padded wavefront.
# (Equivalent to the Python tree recursion in the PyTorch module.)
# ----------------------------------------------------------------------------
def _build_wavefront_schedule(feat_idx, left_slot, right_slot):
    fi = np.asarray(feat_idx, dtype=np.int64)
    lp = np.asarray(left_slot, dtype=np.int64)
    rp = np.asarray(right_slot, dtype=np.int64)
    N = fi.shape[0]
    NONE = N

    # Level = distance from leaves. Requires a true post-order schedule
    # (children strictly precede their parent) — validate instead of silently
    # producing wrong levels.
    level = np.zeros(N, np.int64)
    for n in range(N):
        for child in (lp[n], rp[n]):
            if child != NONE:
                if not (0 <= child < n):
                    raise ValueError(
                        "schedule is not post-order: child slot "
                        f"{int(child)} does not precede parent slot {n}")
                level[n] = max(level[n], int(level[child]) + 1)
    L = int(level.max()) + 1
    counts = np.bincount(level, minlength=L)
    W = int(max(8, ((int(counts.max()) + 7) // 8) * 8))   # pad level width to 8
    LW = L * W
    ZERO = LW

    wave_row_of_post = np.zeros(N, np.int64)
    filled = np.zeros(L, np.int64)
    for n in range(N):
        l = int(level[n])
        wave_row_of_post[n] = l * W + filled[l]
        filled[l] += 1

    left_row = np.full(LW, ZERO, np.int64)
    right_row = np.full(LW, ZERO, np.int64)
    feat_row = np.zeros(LW, np.int64)
    valid = np.zeros(LW, np.float32)
    for n in range(N):
        r = int(wave_row_of_post[n])
        valid[r] = 1.0
        feat_row[r] = fi[n]
        if lp[n] != NONE:
            left_row[r] = wave_row_of_post[lp[n]]
        if rp[n] != NONE:
            right_row[r] = wave_row_of_post[rp[n]]

    return (left_row.astype(np.int32), right_row.astype(np.int32),
            feat_row.astype(np.int32), valid,
            wave_row_of_post.astype(np.int32), L, W)


def _pack_params_for_kernel(params, gate_lanes, feat_pad, compute_dtype):
    """Pack gates into `gate_lanes`-wide blocks, fuse px|ioffu_x and the
    left/right recurrent weights, zero-pad the feature dim to `feat_pad`."""
    F, H = params["w_px"].shape
    Hs = gate_lanes

    def expand_gate_cols(w):
        # (..., 6H) -> (..., 6*Hs); gate g in lanes [g*Hs, g*Hs + H)
        lead = w.shape[:-1]
        wg = w.reshape(lead + (6, H))
        wg = jnp.pad(wg, [(0, 0)] * len(lead) + [(0, 0), (0, Hs - H)])
        return wg.reshape(lead + (6 * Hs,))

    # Fused x-projection weight: [ ioffu_x (6*Hs) | px (Hs) ]
    w_x_p = expand_gate_cols(params["w_x"])                                 # (F, 6*Hs)
    w_px_p = jnp.pad(params["w_px"], ((0, 0), (0, Hs - H)))                 # (F, Hs)
    w_xcomb = jnp.concatenate([w_x_p, w_px_p], axis=1)                      # (F, 7*Hs)
    w_xcomb = jnp.pad(w_xcomb, ((0, feat_pad - F), (0, 0))).astype(compute_dtype)

    b_ioffu = expand_gate_cols(params["b_x"] + params["b_hl"] + params["b_hr"])
    b_px_p = jnp.pad(params["b_px"], ((0, 0), (0, Hs - H)))
    b_xcomb = jnp.concatenate([b_ioffu, b_px_p], axis=1).astype(jnp.float32)

    # Fused recurrent weight consuming [h_l | c_l | h_r | c_r]; c rows are zero.
    w_hl_p = jnp.pad(expand_gate_cols(params["w_hl"]), ((0, Hs - H), (0, 0)))
    w_hr_p = jnp.pad(expand_gate_cols(params["w_hr"]), ((0, Hs - H), (0, 0)))
    zeros = jnp.zeros((Hs, 6 * Hs), jnp.float32)
    w_h = jnp.concatenate([w_hl_p, zeros, w_hr_p, zeros], axis=0).astype(compute_dtype)
    return w_xcomb, b_xcomb, w_h


def bi_tree_lstm_forward(feat_idx, left_slot, right_slot, features, params,
                         *, compute_dtype=jnp.bfloat16):
    """Runs the leaves->root TreeLSTM. Returns (hidden [N,H] in post-order, order [N])."""
    N, F = features.shape
    H = params["w_px"].shape[1]
    # Gate lane stride: pack two gates per 128-lane block when H <= 64.
    Hs = 64 if H <= 64 else ((H + 127) // 128) * 128
    Fp = ((F + 127) // 128) * 128

    (left_row, right_row, feat_row, valid,
     wave_row_of_post, L, W) = _build_wavefront_schedule(feat_idx, left_slot, right_slot)
    LW = L * W

    # Pre-gather features into padded wavefront order; zero dummy rows and pad
    # the feature dim to a lane-dense multiple of 128.
    feats_wp = features[jnp.asarray(feat_row)] * jnp.asarray(valid)[:, None]
    feats_wp = jnp.pad(feats_wp, ((0, 0), (0, Fp - F))).astype(compute_dtype)

    w_xcomb, b_xcomb, w_h = _pack_params_for_kernel(params, Hs, Fp, compute_dtype)

    # VMEM budget (all buffers are unblocked single copies) + headroom.
    cs = np.dtype(compute_dtype).itemsize
    vmem_bytes = (
        LW * Fp * cs                      # feats
        + Fp * 7 * Hs * cs                # fused x weight
        + 7 * Hs * 4                      # fused bias
        + 4 * Hs * 6 * Hs * cs            # fused recurrent weight
        + (LW + 1) * 2 * Hs * 4           # [h|c] state (output)
        + L * W * 7 * Hs * cs             # xp scratch
        + LW * 7 * Hs * 4                 # prologue f32 intermediate
    )
    vmem_limit = int(min(64 << 20, max(16 << 20, 2 * vmem_bytes + (4 << 20))))

    smem = pl.BlockSpec(memory_space=pltpu.MemorySpace.SMEM)
    vmem = pl.BlockSpec(memory_space=pltpu.MemorySpace.VMEM)

    state = pl.pallas_call(
        _tree_lstm_wavefront_kernel,
        out_shape=jax.ShapeDtypeStruct((LW + 1, 2 * Hs), jnp.float32),
        in_specs=[
            smem, smem,                    # left_row, right_row
            vmem,                          # features (wavefront order)
            vmem, vmem,                    # fused x weight / bias
            vmem,                          # fused recurrent weight
        ],
        out_specs=vmem,
        scratch_shapes=[pltpu.VMEM((L, W, 7 * Hs), compute_dtype)],   # xp slabs
        compiler_params=pltpu.CompilerParams(vmem_limit_bytes=vmem_limit),
    )(
        jnp.asarray(left_row), jnp.asarray(right_row), feats_wp,
        w_xcomb, b_xcomb, w_h,
    )

    # h is the first Hs lanes of each state row; re-order to the post-order
    # hidden cat order of the PyTorch module and strip padding.
    hidden = state[jnp.asarray(wave_row_of_post), :H]
    # order[obj_index] = processing step (post-order).
    order = jnp.zeros((N,), jnp.int32).at[jnp.asarray(feat_idx, jnp.int32)].set(
        jnp.arange(N, dtype=jnp.int32)
    )
    return hidden, order


# ----------------------------------------------------------------------------
# Deterministic parameter init (mirrors block_orthogonal + bias fills).
# ----------------------------------------------------------------------------
def _orthogonal(key, rows, cols):
    a = jax.random.normal(key, (max(rows, cols), min(rows, cols)), jnp.float32)
    q, r = jnp.linalg.qr(a)
    q = q * jnp.sign(jnp.diagonal(r))
    if rows < cols:
        q = q.T
    return q[:rows, :cols]


def _block_orthogonal(key, shape, split):
    out_dim, in_dim = shape
    bo, bi = split
    blocks = []
    keys = jax.random.split(key, (out_dim // bo) * (in_dim // bi))
    k = 0
    for _ in range(out_dim // bo):
        row_blocks = []
        for _ in range(in_dim // bi):
            row_blocks.append(_orthogonal(keys[k], bo, bi))
            k += 1
        blocks.append(jnp.concatenate(row_blocks, axis=1))
    return jnp.concatenate(blocks, axis=0)


def make_params(key, feat_dim, h_dim):
    k1, k2, k3, k4 = jax.random.split(key, 4)
    # PyTorch Linear weights are (out, in); we store the transpose (in, out).
    w_px = _block_orthogonal(k1, (h_dim, feat_dim), (h_dim, feat_dim)).T
    w_x = _block_orthogonal(k2, (6 * h_dim, feat_dim), (h_dim, feat_dim)).T
    w_hl = _block_orthogonal(k3, (6 * h_dim, h_dim), (h_dim, h_dim)).T
    w_hr = _block_orthogonal(k4, (6 * h_dim, h_dim), (h_dim, h_dim)).T

    b_px = jnp.zeros((1, h_dim), jnp.float32)
    b_x = jnp.zeros((1, 6 * h_dim), jnp.float32)
    b_h = jnp.zeros((6 * h_dim,), jnp.float32)
    b_h = b_h.at[2 * h_dim:4 * h_dim].set(0.5)     # forget-gate bias fill(0.5)
    b_hl = b_h.reshape(1, -1)
    b_hr = b_h.reshape(1, -1)
    return {
        "w_px": w_px, "b_px": b_px,
        "w_x": w_x, "b_x": b_x,
        "w_hl": w_hl, "b_hl": b_hl,
        "w_hr": w_hr, "b_hr": b_hr,
    }


# ----------------------------------------------------------------------------
# Pure-JAX reference (mirrors _node_forward + the recursive traversal), f32.
# ----------------------------------------------------------------------------
def reference_forward(feat_idx, left_slot, right_slot, features, params):
    N = features.shape[0]
    H = params["w_px"].shape[1]
    c_hist = [None] * N
    h_hist = [None] * N
    hidden = []
    zero = jnp.zeros((1, H), jnp.float32)

    def get(hist, slot):
        return zero if slot == N else hist[slot]

    for n in range(N):
        fi = int(feat_idx[n])
        ls = int(left_slot[n])
        rs = int(right_slot[n])
        feat = features[fi:fi + 1, :]
        lc, lh = get(c_hist, ls), get(h_hist, ls)
        rc, rh = get(c_hist, rs), get(h_hist, rs)

        px = feat @ params["w_px"] + params["b_px"]
        ioffu = (feat @ params["w_x"] + params["b_x"]
                 + lh @ params["w_hl"] + params["b_hl"]
                 + rh @ params["w_hr"] + params["b_hr"])
        i_g = jax.nn.sigmoid(ioffu[:, 0 * H:1 * H])
        o_g = jax.nn.sigmoid(ioffu[:, 1 * H:2 * H])
        f_l = jax.nn.sigmoid(ioffu[:, 2 * H:3 * H])
        f_r = jax.nn.sigmoid(ioffu[:, 3 * H:4 * H])
        u_g = jnp.tanh(ioffu[:, 4 * H:5 * H])
        r_g = jax.nn.sigmoid(ioffu[:, 5 * H:6 * H])
        c = i_g * u_g + f_l * lc + f_r * rc
        h = o_g * jnp.tanh(c)
        h_final = r_g * h + (1.0 - r_g) * px
        c_hist[n], h_hist[n] = c, h_final
        hidden.append(h_final)
    return jnp.concatenate(hidden, axis=0)


if __name__ == "__main__":
    num_obj = 7     # complete binary tree with 7 nodes
    feat_dim = 64
    h_dim = 32

    key = jax.random.PRNGKey(0)
    k_feat, k_params = jax.random.split(key)
    features = jax.random.normal(k_feat, (num_obj, feat_dim), jnp.float32)
    params = make_params(k_params, feat_dim, h_dim)

    # Tree (object indices):            3
    #                                 /   \
    #                                1     5
    #                               / \   / \
    #                              0   2 4   6
    # Post-order (left, right, node) processing: objects 0,2,1,4,6,5,3.
    feat_idx = jnp.array([0, 2, 1, 4, 6, 5, 3], jnp.int32)
    NONE = num_obj  # "no child"
    left_slot = jnp.array([NONE, NONE, 0, NONE, NONE, 3, 2], jnp.int32)
    right_slot = jnp.array([NONE, NONE, 1, NONE, NONE, 4, 5], jnp.int32)

    hidden, order = jax.block_until_ready(
        bi_tree_lstm_forward(feat_idx, left_slot, right_slot, features, params)
    )

    hidden_ref = reference_forward(feat_idx, left_slot, right_slot, features, params)
    assert hidden.shape == (num_obj, h_dim)
    assert order.shape == (num_obj,)
    # Tolerance sized for bf16 weights/activations with f32 accumulation/state.
    assert jnp.allclose(hidden, hidden_ref, atol=2e-2, rtol=2e-2), (
        float(jnp.max(jnp.abs(hidden - hidden_ref)))
    )

    print("KERNEL_OK")
</pallas_src>

<mosaic_0001>
module attributes {stable_mosaic.version = 11 : i64} {
  func.func @_tree_lstm_wavefront_kernel(%arg0: memref<24xi32, #tpu.memory_space<smem>>, %arg1: memref<24xi32, #tpu.memory_space<smem>>, %arg2: memref<24x128xbf16, #tpu.memory_space<vmem>>, %arg3: memref<128x448xbf16, #tpu.memory_space<vmem>>, %arg4: memref<1x448xf32, #tpu.memory_space<vmem>>, %arg5: memref<256x384xbf16, #tpu.memory_space<vmem>>, %arg6: memref<25x128xf32, #tpu.memory_space<vmem>>, %arg7: memref<3x8x448xbf16, #tpu.memory_space<vmem>>) attributes {dimension_semantics = [], scalar_prefetch = 0 : i64, scratch_operands = 1 : i64, tpu.core_type = #tpu.core_type<tc>} {
    %cst = arith.constant 0.000000e+00 : f32
    %0 = vector.broadcast %cst : f32 to vector<1x128xf32>
    %c24 = arith.constant 24 : index
    %c0 = arith.constant 0 : index
    %1 = vector.load %arg6[%c24, %c0] : memref<25x128xf32, #tpu.memory_space<vmem>>, vector<1x128xf32>
    tpu.vector_store %arg6[%c24, %c0], %0 {strides = array<i32>} : memref<25x128xf32, #tpu.memory_space<vmem>>, vector<1x128xf32>,
    %c0_0 = arith.constant 0 : index
    %c0_1 = arith.constant 0 : index
    %2 = vector.load %arg2[%c0_0, %c0_1] : memref<24x128xbf16, #tpu.memory_space<vmem>>, vector<24x128xbf16>
    %c0_2 = arith.constant 0 : index
    %c0_3 = arith.constant 0 : index
    %3 = vector.load %arg3[%c0_2, %c0_3] : memref<128x448xbf16, #tpu.memory_space<vmem>>, vector<128x448xbf16>
    %cst_4 = arith.constant dense<0.000000e+00> : vector<24x448xf32>
    %4 = tpu.matmul %2, %3, %cst_4 {dimension_numbers = #tpu.dot_dimension_numbers<[1], [0], [0], [1], [0, 0, 1, 1], [], []>} : vector<24x128xbf16>, vector<128x448xbf16>, vector<24x448xf32> -> vector<24x448xf32>
    %c0_5 = arith.constant 0 : index
    %c0_6 = arith.constant 0 : index
    %5 = vector.load %arg4[%c0_5, %c0_6] : memref<1x448xf32, #tpu.memory_space<vmem>>, vector<1x448xf32>
    %6 = vector.broadcast %5 : vector<1x448xf32> to vector<24x448xf32>
    %7 = arith.addf %4, %6 : vector<24x448xf32>
    %8 = vector.extract_strided_slice %7 {offsets = [0, 0], sizes = [8, 448], strides = [1, 1]} : vector<24x448xf32> to vector<8x448xf32>
    %9 = arith.truncf %8 : vector<8x448xf32> to vector<8x448xbf16>
    %c0_7 = arith.constant 0 : index
    %c0_8 = arith.constant 0 : index
    %c0_9 = arith.constant 0 : index
    %10 = vector.load %arg7[%c0_7, %c0_8, %c0_9] : memref<3x8x448xbf16, #tpu.memory_space<vmem>>, vector<1x8x448xbf16>
    %11 = vector.shape_cast %10 : vector<1x8x448xbf16> to vector<8x448xbf16>
    %12 = vector.shape_cast %9 : vector<8x448xbf16> to vector<1x8x448xbf16>
    tpu.vector_store %arg7[%c0_7, %c0_8, %c0_9], %12 {strides = array<i32>} : memref<3x8x448xbf16, #tpu.memory_space<vmem>>, vector<1x8x448xbf16>,
    %13 = vector.extract_strided_slice %7 {offsets = [8, 0], sizes = [8, 448], strides = [1, 1]} : vector<24x448xf32> to vector<8x448xf32>
    %14 = arith.truncf %13 : vector<8x448xf32> to vector<8x448xbf16>
    %c1 = arith.constant 1 : index
    %c0_10 = arith.constant 0 : index
    %c0_11 = arith.constant 0 : index
    %15 = vector.load %arg7[%c1, %c0_10, %c0_11] : memref<3x8x448xbf16, #tpu.memory_space<vmem>>, vector<1x8x448xbf16>
    %16 = vector.shape_cast %15 : vector<1x8x448xbf16> to vector<8x448xbf16>
    %17 = vector.shape_cast %14 : vector<8x448xbf16> to vector<1x8x448xbf16>
    tpu.vector_store %arg7[%c1, %c0_10, %c0_11], %17 {strides = array<i32>} : memref<3x8x448xbf16, #tpu.memory_space<vmem>>, vector<1x8x448xbf16>,
    %18 = vector.extract_strided_slice %7 {offsets = [16, 0], sizes = [8, 448], strides = [1, 1]} : vector<24x448xf32> to vector<8x448xf32>
    %19 = arith.truncf %18 : vector<8x448xf32> to vector<8x448xbf16>
    %c2 = arith.constant 2 : index
    %c0_12 = arith.constant 0 : index
    %c0_13 = arith.constant 0 : index
    %20 = vector.load %arg7[%c2, %c0_12, %c0_13] : memref<3x8x448xbf16, #tpu.memory_space<vmem>>, vector<1x8x448xbf16>
    %21 = vector.shape_cast %20 : vector<1x8x448xbf16> to vector<8x448xbf16>
    %22 = vector.shape_cast %19 : vector<8x448xbf16> to vector<1x8x448xbf16>
    tpu.vector_store %arg7[%c2, %c0_12, %c0_13], %22 {strides = array<i32>} : memref<3x8x448xbf16, #tpu.memory_space<vmem>>, vector<1x8x448xbf16>,
    %c0_i32 = arith.constant 0 : i32
    %c3_i32 = arith.constant 3 : i32
    %23 = arith.addi %c0_i32, %c3_i32 : i32
    %c1_i32 = arith.constant 1 : i32
    scf.for %arg8 = %c0_i32 to %23 step %c1_i32  : i32 {
      %c8_i32 = arith.constant 8 : i32
      %24 = arith.muli %arg8, %c8_i32 : i32
      %25 = tpu.assume_multiple %24, 8 : i32
      %c0_i32_15 = arith.constant 0 : i32
      %26 = arith.addi %25, %c0_i32_15 : i32
      %27 = arith.index_cast %26 : i32 to index
      %28 = memref.load %arg0[%27] : memref<24xi32, #tpu.memory_space<smem>>
      %c0_i32_16 = arith.constant 0 : i32
      %29 = arith.addi %25, %c0_i32_16 : i32
      %30 = arith.index_cast %29 : i32 to index
      %31 = memref.load %arg1[%30] : memref<24xi32, #tpu.memory_space<smem>>
      %c1_i32_17 = arith.constant 1 : i32
      %32 = arith.addi %25, %c1_i32_17 : i32
      %33 = arith.index_cast %32 : i32 to index
      %34 = memref.load %arg0[%33] : memref<24xi32, #tpu.memory_space<smem>>
      %c1_i32_18 = arith.constant 1 : i32
      %35 = arith.addi %25, %c1_i32_18 : i32
      %36 = arith.index_cast %35 : i32 to index
      %37 = memref.load %arg1[%36] : memref<24xi32, #tpu.memory_space<smem>>
      %c2_i32 = arith.constant 2 : i32
      %38 = arith.addi %25, %c2_i32 : i32
      %39 = arith.index_cast %38 : i32 to index
      %40 = memref.load %arg0[%39] : memref<24xi32, #tpu.memory_space<smem>>
      %c2_i32_19 = arith.constant 2 : i32
      %41 = arith.addi %25, %c2_i32_19 : i32
      %42 = arith.index_cast %41 : i32 to index
      %43 = memref.load %arg1[%42] : memref<24xi32, #tpu.memory_space<smem>>
      %c3_i32_20 = arith.constant 3 : i32
      %44 = arith.addi %25, %c3_i32_20 : i32
      %45 = arith.index_cast %44 : i32 to index
      %46 = memref.load %arg0[%45] : memref<24xi32, #tpu.memory_space<smem>>
      %c3_i32_21 = arith.constant 3 : i32
      %47 = arith.addi %25, %c3_i32_21 : i32
      %48 = arith.index_cast %47 : i32 to index
      %49 = memref.load %arg1[%48] : memref<24xi32, #tpu.memory_space<smem>>
      %c4_i32 = arith.constant 4 : i32
      %50 = arith.addi %25, %c4_i32 : i32
      %51 = arith.index_cast %50 : i32 to index
      %52 = memref.load %arg0[%51] : memref<24xi32, #tpu.memory_space<smem>>
      %c4_i32_22 = arith.constant 4 : i32
      %53 = arith.addi %25, %c4_i32_22 : i32
      %54 = arith.index_cast %53 : i32 to index
      %55 = memref.load %arg1[%54] : memref<24xi32, #tpu.memory_space<smem>>
      %c5_i32 = arith.constant 5 : i32
      %56 = arith.addi %25, %c5_i32 : i32
      %57 = arith.index_cast %56 : i32 to index
      %58 = memref.load %arg0[%57] : memref<24xi32, #tpu.memory_space<smem>>
      %c5_i32_23 = arith.constant 5 : i32
      %59 = arith.addi %25, %c5_i32_23 : i32
      %60 = arith.index_cast %59 : i32 to index
      %61 = memref.load %arg1[%60] : memref<24xi32, #tpu.memory_space<smem>>
      %c6_i32 = arith.constant 6 : i32
      %62 = arith.addi %25, %c6_i32 : i32
      %63 = arith.index_cast %62 : i32 to index
      %64 = memref.load %arg0[%63] : memref<24xi32, #tpu.memory_space<smem>>
      %c6_i32_24 = arith.constant 6 : i32
      %65 = arith.addi %25, %c6_i32_24 : i32
      %66 = arith.index_cast %65 : i32 to index
      %67 = memref.load %arg1[%66] : memref<24xi32, #tpu.memory_space<smem>>
      %c7_i32 = arith.constant 7 : i32
      %68 = arith.addi %25, %c7_i32 : i32
      %69 = arith.index_cast %68 : i32 to index
      %70 = memref.load %arg0[%69] : memref<24xi32, #tpu.memory_space<smem>>
      %c7_i32_25 = arith.constant 7 : i32
      %71 = arith.addi %25, %c7_i32_25 : i32
      %72 = arith.index_cast %71 : i32 to index
      %73 = memref.load %arg1[%72] : memref<24xi32, #tpu.memory_space<smem>>
      %74 = arith.index_cast %28 : i32 to index
      %c0_26 = arith.constant 0 : index
      %75 = vector.load %arg6[%74, %c0_26] : memref<25x128xf32, #tpu.memory_space<vmem>>, vector<1x128xf32>
      %76 = arith.index_cast %34 : i32 to index
      %c0_27 = arith.constant 0 : index
      %77 = vector.load %arg6[%76, %c0_27] : memref<25x128xf32, #tpu.memory_space<vmem>>, vector<1x128xf32>
      %78 = arith.index_cast %40 : i32 to index
      %c0_28 = arith.constant 0 : index
      %79 = vector.load %arg6[%78, %c0_28] : memref<25x128xf32, #tpu.memory_space<vmem>>, vector<1x128xf32>
      %80 = arith.index_cast %46 : i32 to index
      %c0_29 = arith.constant 0 : index
      %81 = vector.load %arg6[%80, %c0_29] : memref<25x128xf32, #tpu.memory_space<vmem>>, vector<1x128xf32>
      %82 = arith.index_cast %52 : i32 to index
      %c0_30 = arith.constant 0 : index
      %83 = vector.load %arg6[%82, %c0_30] : memref<25x128xf32, #tpu.memory_space<vmem>>, vector<1x128xf32>
      %84 = arith.index_cast %58 : i32 to index
      %c0_31 = arith.constant 0 : index
      %85 = vector.load %arg6[%84, %c0_31] : memref<25x128xf32, #tpu.memory_space<vmem>>, vector<1x128xf32>
      %86 = arith.index_cast %64 : i32 to index
      %c0_32 = arith.constant 0 : index
      %87 = vector.load %arg6[%86, %c0_32] : memref<25x128xf32, #tpu.memory_space<vmem>>, vector<1x128xf32>
      %88 = arith.index_cast %70 : i32 to index
      %c0_33 = arith.constant 0 : index
      %89 = vector.load %arg6[%88, %c0_33] : memref<25x128xf32, #tpu.memory_space<vmem>>, vector<1x128xf32>
      %90 = tpu.concatenate %75, %77, %79, %81, %83, %85, %87, %89 in 0 : vector<1x128xf32>, vector<1x128xf32>, vector<1x128xf32>, vector<1x128xf32>, vector<1x128xf32>, vector<1x128xf32>, vector<1x128xf32>, vector<1x128xf32> -> vector<8x128xf32>
      %91 = arith.index_cast %31 : i32 to index
      %c0_34 = arith.constant 0 : index
      %92 = vector.load %arg6[%91, %c0_34] : memref<25x128xf32, #tpu.memory_space<vmem>>, vector<1x128xf32>
      %93 = arith.index_cast %37 : i32 to index
      %c0_35 = arith.constant 0 : index
      %94 = vector.load %arg6[%93, %c0_35] : memref<25x128xf32, #tpu.memory_space<vmem>>, vector<1x128xf32>
      %95 = arith.index_cast %43 : i32 to index
      %c0_36 = arith.constant 0 : index
      %96 = vector.load %arg6[%95, %c0_36] : memref<25x128xf32, #tpu.memory_space<vmem>>, vector<1x128xf32>
      %97 = arith.index_cast %49 : i32 to index
      %c0_37 = arith.constant 0 : index
      %98 = vector.load %arg6[%97, %c0_37] : memref<25x128xf32, #tpu.memory_space<vmem>>, vector<1x128xf32>
      %99 = arith.index_cast %55 : i32 to index
      %c0_38 = arith.constant 0 : index
      %100 = vector.load %arg6[%99, %c0_38] : memref<25x128xf32, #tpu.memory_space<vmem>>, vector<1x128xf32>
      %101 = arith.index_cast %61 : i32 to index
      %c0_39 = arith.constant 0 : index
      %102 = vector.load %arg6[%101, %c0_39] : memref<25x128xf32, #tpu.memory_space<vmem>>, vector<1x128xf32>
      %103 = arith.index_cast %67 : i32 to index
      %c0_40 = arith.constant 0 : index
      %104 = vector.load %arg6[%103, %c0_40] : memref<25x128xf32, #tpu.memory_space<vmem>>, vector<1x128xf32>
      %105 = arith.index_cast %73 : i32 to index
      %c0_41 = arith.constant 0 : index
      %106 = vector.load %arg6[%105, %c0_41] : memref<25x128xf32, #tpu.memory_space<vmem>>, vector<1x128xf32>
      %107 = tpu.concatenate %92, %94, %96, %98, %100, %102, %104, %106 in 0 : vector<1x128xf32>, vector<1x128xf32>, vector<1x128xf32>, vector<1x128xf32>, vector<1x128xf32>, vector<1x128xf32>, vector<1x128xf32>, vector<1x128xf32> -> vector<8x128xf32>
      %108 = vector.extract_strided_slice %90 {offsets = [0, 64], sizes = [8, 64], strides = [1, 1]} : vector<8x128xf32> to vector<8x64xf32>
      %109 = vector.extract_strided_slice %107 {offsets = [0, 64], sizes = [8, 64], strides = [1, 1]} : vector<8x128xf32> to vector<8x64xf32>
      %110 = tpu.concatenate %90, %107 in 1 : vector<8x128xf32>, vector<8x128xf32> -> vector<8x256xf32>
      %111 = arith.index_cast %arg8 : i32 to index
      %c0_42 = arith.constant 0 : index
      %c0_43 = arith.constant 0 : index
      %112 = vector.load %arg7[%111, %c0_42, %c0_43] : memref<3x8x448xbf16, #tpu.memory_space<vmem>>, vector<1x8x448xbf16>
      %113 = vector.shape_cast %112 : vector<1x8x448xbf16> to vector<8x448xbf16>
      %114 = arith.extf %113 : vector<8x448xbf16> to vector<8x448xf32>
      %115 = arith.truncf %110 : vector<8x256xf32> to vector<8x256xbf16>
      %c0_44 = arith.constant 0 : index
      %c0_45 = arith.constant 0 : index
      %116 = vector.load %arg5[%c0_44, %c0_45] : memref<256x384xbf16, #tpu.memory_space<vmem>>, vector<256x384xbf16>
      %cst_46 = arith.constant dense<0.000000e+00> : vector<8x384xf32>
      %117 = tpu.matmul %115, %116, %cst_46 {dimension_numbers = #tpu.dot_dimension_numbers<[1], [0], [0], [1], [0, 0, 1, 1], [], []>} : vector<8x256xbf16>, vector<256x384xbf16>, vector<8x384xf32> -> vector<8x384xf32>
      %118 = vector.extract_strided_slice %114 {offsets = [0, 0], sizes = [8, 384], strides = [1, 1]} : vector<8x448xf32> to vector<8x384xf32>
      %119 = arith.addf %117, %118 : vector<8x384xf32>
      %120 = vector.extract_strided_slice %114 {offsets = [0, 384], sizes = [8, 64], strides = [1, 1]} : vector<8x448xf32> to vector<8x64xf32>
      %121 = vector.extract_strided_slice %119 {offsets = [0, 0], sizes = [8, 64], strides = [1, 1]} : vector<8x384xf32> to vector<8x64xf32>
      %122 = arith.negf %121 : vector<8x64xf32>
      %123 = math.exp %122 : vector<8x64xf32>
      %cst_47 = arith.constant 1.000000e+00 : f32
      %124 = vector.broadcast %cst_47 : f32 to vector<8x64xf32>
      %125 = arith.addf %124, %123 : vector<8x64xf32>
      %126 = arith.divf %124, %125 : vector<8x64xf32>
      %127 = vector.extract_strided_slice %119 {offsets = [0, 64], sizes = [8, 64], strides = [1, 1]} : vector<8x384xf32> to vector<8x64xf32>
      %128 = arith.negf %127 : vector<8x64xf32>
      %129 = math.exp %128 : vector<8x64xf32>
      %cst_48 = arith.constant 1.000000e+00 : f32
      %130 = vector.broadcast %cst_48 : f32 to vector<8x64xf32>
      %131 = arith.addf %130, %129 : vector<8x64xf32>
      %132 = arith.divf %130, %131 : vector<8x64xf32>
      %133 = vector.extract_strided_slice %119 {offsets = [0, 128], sizes = [8, 64], strides = [1, 1]} : vector<8x384xf32> to vector<8x64xf32>
      %134 = arith.negf %133 : vector<8x64xf32>
      %135 = math.exp %134 : vector<8x64xf32>
      %cst_49 = arith.constant 1.000000e+00 : f32
      %136 = vector.broadcast %cst_49 : f32 to vector<8x64xf32>
      %137 = arith.addf %136, %135 : vector<8x64xf32>
      %138 = arith.divf %136, %137 : vector<8x64xf32>
      %139 = vector.extract_strided_slice %119 {offsets = [0, 192], sizes = [8, 64], strides = [1, 1]} : vector<8x384xf32> to vector<8x64xf32>
      %140 = arith.negf %139 : vector<8x64xf32>
      %141 = math.exp %140 : vector<8x64xf32>
      %cst_50 = arith.constant 1.000000e+00 : f32
      %142 = vector.broadcast %cst_50 : f32 to vector<8x64xf32>
      %143 = arith.addf %142, %141 : vector<8x64xf32>
      %144 = arith.divf %142, %143 : vector<8x64xf32>
      %145 = vector.extract_strided_slice %119 {offsets = [0, 256], sizes = [8, 64], strides = [1, 1]} : vector<8x384xf32> to vector<8x64xf32>
      %146 = math.tanh %145 : vector<8x64xf32>
      %147 = vector.extract_strided_slice %119 {offsets = [0, 320], sizes = [8, 64], strides = [1, 1]} : vector<8x384xf32> to vector<8x64xf32>
      %148 = arith.negf %147 : vector<8x64xf32>
      %149 = math.exp %148 : vector<8x64xf32>
      %cst_51 = arith.constant 1.000000e+00 : f32
      %150 = vector.broadcast %cst_51 : f32 to vector<8x64xf32>
      %151 = arith.addf %150, %149 : vector<8x64xf32>
      %152 = arith.divf %150, %151 : vector<8x64xf32>
      %153 = arith.mulf %126, %146 : vector<8x64xf32>
      %154 = arith.mulf %138, %108 : vector<8x64xf32>
      %155 = arith.addf %153, %154 : vector<8x64xf32>
      %156 = arith.mulf %144, %109 : vector<8x64xf32>
      %157 = arith.addf %155, %156 : vector<8x64xf32>
      %158 = math.tanh %157 : vector<8x64xf32>
      %159 = arith.mulf %132, %158 : vector<8x64xf32>
      %160 = arith.subf %159, %120 : vector<8x64xf32>
      %161 = arith.mulf %152, %160 : vector<8x64xf32>
      %162 = arith.addf %120, %161 : vector<8x64xf32>
      %163 = tpu.concatenate %162, %157 in 1 : vector<8x64xf32>, vector<8x64xf32> -> vector<8x128xf32>
      %164 = arith.index_cast %25 : i32 to index
      %c0_52 = arith.constant 0 : index
      %165 = vector.load %arg6[%164, %c0_52] : memref<25x128xf32, #tpu.memory_space<vmem>>, vector<8x128xf32>
      tpu.vector_store %arg6[%164, %c0_52], %163 {strides = array<i32>} : memref<25x128xf32, #tpu.memory_space<vmem>>, vector<8x128xf32>,
    }
    %c3_i32_14 = arith.constant 3 : i32
    return
  }
}

</mosaic_0001>

<bundles_post_ra>
// kernel: tpu_custom_call.1
= control target key start
LH: loop header
LB: loop body
LE: loop exit
PB: predicated region body
PF: predicated region fallthrough
CT: control target
= control target key end

     0   :  { %11 = vsyncpa [#allocation5], 0  ;;  %s1824_s0 = inlined_call_operand.vmem [shape: s32[24], index: 0, kind: input, shape index: {}]   ;;  %s1825_s1 = inlined_call_operand.vmem [shape: s32[24], index: 1, kind: input, shape index: {}]   ;;  %s1826_s2 = inlined_call_operand.vmem [shape: bf16[24,128], index: 2, kind: input, shape index: {}]   ;;  %s1827_s3 = inlined_call_operand.vmem [shape: bf16[128,448], index: 3, kind: input, shape index: {}]   ;;  %s1828_s4 = inlined_call_operand.vmem [shape: f32[1,448], index: 4, kind: input, shape index: {}]   ;;  %s1829_s5 = inlined_call_operand.vmem [shape: bf16[256,384], index: 5, kind: input, shape index: {}]   ;;  %s1830_s6 = inlined_call_operand.hbm [shape: f32[25,128], index: 6, kind: output, shape index: {}]  }
   0x1   :  { %12 = vsyncpa [#allocation7], 0 }
   0x2   :  { %13 = vsyncpa [#allocation4], 0  ;;  %s20_s23 = sshll.u32 %s1824_s0, 4  ;;  %s30_s26 = sshll.u32 %s1825_s1, 4  ;;  %s21_s23 = int_to_ptr.vmem [resolvable:$true] %s20_s23  ;;  %s31_s26 = int_to_ptr.vmem [resolvable:$true] %s30_s26 }
   0x3   :  { %s1344_s27 = scalar_lea.vmem %s21_s23, 16  ;;  %p1349_p1 = scmp.lt.s32.totalorder %s21_s23, %s21_s23 }
   0x4   :  { %p1345_p0 = scmp.ne.s32.totalorder %s21_s23, %s1344_s27  ;;  %p1350_p2 = scmp.lt.s32.totalorder %s1344_s27, %s1344_s27 }
   0x6   :  { %p1351_p3 = por %p1350_p2, %p1349_p1 }
   0x8   :  { %p1352_p4 = pnand %p1351_p3, %p1345_p0 }
   0xa   :  { %1355 = shalt.err (!%p1352_p4)
}
   0xb   :  { %s1404_s28 = smov [#allocation3]   ;;  %s1356_s29 = scalar_lea.vmem %s31_s26, 16 }
   0xc   :  { %23 = dma.vmem_to_smem %s21_s23, 16, %s1404_s28, [#allocation5]  }
   0xd   :  { %p1357_p5 = scmp.ne.s32.totalorder %s31_s26, %s1356_s29  ;;  %p1361_p6 = scmp.lt.s32.totalorder %s31_s26, %s31_s26 }
   0xe   :  { %p1362_p7 = scmp.lt.s32.totalorder %s1356_s29, %s1356_s29 }
  0x10   :  { %p1363_p8 = por %p1362_p7, %p1361_p6 }
  0x12   :  { %p1364_p9 = pnand %p1363_p8, %p1357_p5 }
  0x14   :  { %1367 = shalt.err (!%p1364_p9)
}
  0x15   :  { %s1405_s0 = smov [#allocation6]  }
  0x16   :  { %33 = dma.vmem_to_smem %s31_s26, 16, %s1405_s0, [#allocation7]  }
  0x17   :  { %1394 = dma.done.wait [#allocation5], 16  }
  0x18   :  { %1395 = vsyncadd [#allocation5], 4294967280 }
  0x19   :  { %1396 = dma.done.wait [#allocation7], 16  }
  0x1a   :  { %1397 = vsyncadd [#allocation7], 4294967280 }
  0x1b   :  { %48 = sfence }
  0x1c   :  { %v1214_v0 = vld [vmem:[%s1827_s3 + $0x4] ss:$16 sps:$4 sm:$0xff]   ;;  %v1406_v1 = vmov 0.0   ;;  %v1216_v2 = vld [vmem:[%s1827_s3 + $0xc] ss:$16 sps:$4 sm:$0xff]   ;;  %v1407_v3 = vmov 0   ;;  %v88_v36 = vlaneseq }
  0x1d   :  { %50 = vst [vmem:[#allocation8 + $0x18] sm:$0x1] %v1406_v1  ;;  %310 = vmatprep.mubr.bf16.mxu0 %v1407_v3  ;;  %361 = vmatprep.mubr.bf16.mxu1 %v1407_v3  ;;  %v1218_v4 = vld [vmem:[%s1827_s3] ss:$16 sps:$4 sm:$0xff]   ;;  %v1219_v5 = vld [vmem:[%s1827_s3 + $0x8] ss:$16 sps:$4 sm:$0xff]  }
  0x1e   :  { %278 = vmatprep.subr.bf16.mxu0 %v1214_v0  ;;  %329 = vmatprep.subr.bf16.mxu1 %v1216_v2  ;;  %v1220_v6 = vld [vmem:[%s1827_s3 + $0x24] ss:$16 sps:$4 sm:$0xff]   ;;  %v1222_v7 = vld [vmem:[%s1827_s3 + $0x2c] ss:$16 sps:$4 sm:$0xff]   ;;  %v1224_v8 = vld [vmem:[%s1827_s3 + $0x20] ss:$16 sps:$4 sm:$0xff]  }
  0x1f   :  { %279 = vmatpush1.bf16.msra.mxu0 %v1218_v4  ;;  %330 = vmatpush1.bf16.msra.mxu1 %v1219_v5  ;;  %v1225_v9 = vld [vmem:[%s1827_s3 + $0x28] ss:$16 sps:$4 sm:$0xff]   ;;  %v1226_v10 = vld [vmem:[%s1827_s3 + $0x44] ss:$16 sps:$4 sm:$0xff]   ;;  %v1228_v11 = vld [vmem:[%s1827_s3 + $0x4c] ss:$16 sps:$4 sm:$0xff]  }
  0x20   :  { %280 = vmatprep.subr.bf16.mxu0 %v1220_v6  ;;  %331 = vmatprep.subr.bf16.mxu1 %v1222_v7  ;;  %v1230_v12 = vld [vmem:[%s1827_s3 + $0x40] ss:$16 sps:$4 sm:$0xff]   ;;  %v1231_v13 = vld [vmem:[%s1827_s3 + $0x48] ss:$16 sps:$4 sm:$0xff]   ;;  %v1232_v14 = vld [vmem:[%s1827_s3 + $0x64] ss:$16 sps:$4 sm:$0xff]  }
  0x21   :  { %v1234_v15 = vld [vmem:[%s1827_s3 + $0x6c] ss:$16 sps:$4 sm:$0xff]   ;;  %v1236_v16 = vld [vmem:[%s1827_s3 + $0x60] ss:$16 sps:$4 sm:$0xff]   ;;  %v1237_v17 = vld [vmem:[%s1827_s3 + $0x68] ss:$16 sps:$4 sm:$0xff]  }
  0x22   :  { %v1238_v18 = vld [vmem:[%s1827_s3 + $0x84] ss:$16 sps:$4 sm:$0xff]   ;;  %v1240_v19 = vld [vmem:[%s1827_s3 + $0x8c] ss:$16 sps:$4 sm:$0xff]   ;;  %v1242_v20 = vld [vmem:[%s1827_s3 + $0x80] ss:$16 sps:$4 sm:$0xff]  }
  0x23   :  { %281 = vmatpush1.bf16.msra.mxu0 %v1224_v8  ;;  %332 = vmatpush1.bf16.msra.mxu1 %v1225_v9  ;;  %v1243_v21 = vld [vmem:[%s1827_s3 + $0x88] ss:$16 sps:$4 sm:$0xff]   ;;  %v1244_v22 = vld [vmem:[%s1827_s3 + $0xa4] ss:$16 sps:$4 sm:$0xff]   ;;  %v1246_v23 = vld [vmem:[%s1827_s3 + $0xac] ss:$16 sps:$4 sm:$0xff]  }
  0x24   :  { %282 = vmatprep.subr.bf16.mxu0 %v1226_v10  ;;  %333 = vmatprep.subr.bf16.mxu1 %v1228_v11  ;;  %v1248_v24 = vld [vmem:[%s1827_s3 + $0xa0] ss:$16 sps:$4 sm:$0xff]   ;;  %v1249_v25 = vld [vmem:[%s1827_s3 + $0xa8] ss:$16 sps:$4 sm:$0xff]   ;;  %v1250_v26 = vld [vmem:[%s1827_s3 + $0xc4] ss:$16 sps:$4 sm:$0xff]  }
  0x25   :  { %v1252_v27 = vld [vmem:[%s1827_s3 + $0xcc] ss:$16 sps:$4 sm:$0xff]   ;;  %v1254_v28 = vld [vmem:[%s1827_s3 + $0xc0] ss:$16 sps:$4 sm:$0xff]   ;;  %v1255_v29 = vld [vmem:[%s1827_s3 + $0xc8] ss:$16 sps:$4 sm:$0xff]  }
  0x26   :  { %v1256_v30 = vld [vmem:[%s1827_s3 + $0xe4] ss:$16 sps:$4 sm:$0xff]   ;;  %v1258_v31 = vld [vmem:[%s1827_s3 + $0xec] ss:$16 sps:$4 sm:$0xff]   ;;  %v1260_v32 = vld [vmem:[%s1827_s3 + $0xe0] ss:$16 sps:$4 sm:$0xff]  }
  0x27   :  { %283 = vmatpush1.bf16.msra.mxu0 %v1230_v12  ;;  %334 = vmatpush1.bf16.msra.mxu1 %v1231_v13  ;;  %v1261_v33 = vld [vmem:[%s1827_s3 + $0xe8] ss:$16 sps:$4 sm:$0xff]   ;;  %v1262_v34 = vld [vmem:[%s1826_s2] sm:$0xff]   ;;  %v89_v37 = vshrl.u32 %v88_v36, 7  ;;  %vm397_vm0 = vcmask 1043456   ;;  %vm398_vm1 = vcmask 523268  }
  0x28   :  { %284 = vmatprep.subr.bf16.mxu0 %v1232_v14  ;;  %335 = vmatprep.subr.bf16.mxu1 %v1234_v15  ;;  %v1263_v35 = vld [vmem:[%s1826_s2 + $0x8] ss:$0 sps:$4 sm:$0xff]   ;;  %v86_v40 = vld [vmem:[%s1828_s4] sm:$0xf]  ;;  %vm1563_vm2 = vmor %vm398_vm1, %vm397_vm0  ;;  %s1573_s2 = smov 0  }
  0x29   :  { %v90_v38 = vsub.s32 0, %v89_v37  ;;  %v98_v39 = vsub.s32 2, %v89_v37  ;;  %v94_v41 = vsub.s32 1, %v89_v37  ;;  %v102_v42 = vsub.s32 3, %v89_v37 }
  0x2b   :  { %285 = vmatpush1.bf16.msra.mxu0 %v1236_v16  ;;  %336 = vmatpush1.bf16.msra.mxu1 %v1237_v17  ;;  %v91_v43 = vrot.slane %v86_v40, %v90_v38  ;;  %v99_v44 = vrot.slane %v86_v40, %v98_v39  ;;  %v95_v45 = vrot.slane %v86_v40, %v94_v41 }
  0x2c   :  { %286 = vmatprep.subr.bf16.mxu0 %v1238_v18  ;;  %337 = vmatprep.subr.bf16.mxu1 %v1240_v19  ;;  %v103_v46 = vrot.slane %v86_v40, %v102_v42 }
  0x2f   :  { %287 = vmatpush1.bf16.msra.mxu0 %v1242_v20  ;;  %338 = vmatpush1.bf16.msra.mxu1 %v1243_v21 }
  0x30   :  { %288 = vmatprep.subr.bf16.mxu0 %v1244_v22  ;;  %339 = vmatprep.subr.bf16.mxu1 %v1246_v23 }
  0x33   :  { %289 = vmatpush1.bf16.msra.mxu0 %v1248_v24  ;;  %340 = vmatpush1.bf16.msra.mxu1 %v1249_v25 }
  0x34   :  { %290 = vmatprep.subr.bf16.mxu0 %v1250_v26  ;;  %341 = vmatprep.subr.bf16.mxu1 %v1252_v27 }
  0x37   :  { %291 = vmatpush1.bf16.msra.mxu0 %v1254_v28  ;;  %342 = vmatpush1.bf16.msra.mxu1 %v1255_v29 }
  0x38   :  { %292 = vmatprep.subr.bf16.mxu0 %v1256_v30  ;;  %343 = vmatprep.subr.bf16.mxu1 %v1258_v31 }
  0x3b   :  { %293 = vmatpush1.bf16.msra.mxu0 %v1260_v32  ;;  %344 = vmatpush1.bf16.msra.mxu1 %v1261_v33 }
  0x3e   :  { %311 = vmatmul.mubr.bf16.vlgmr.msra.gmra.mrb[0].mxu0 %v1262_v34  ;;  %362 = vmatmul.mubr.bf16.vlgmr.msra.gmra.mrb[0].mxu1 %v1262_v34 }
  0x3f   :  { %320 = vmatprep.mubr.bf16.mxu0 %v1407_v3  ;;  %371 = vmatprep.mubr.bf16.mxu1 %v1407_v3 }
  0x46   :  { %321 = vmatmul.mubr.bf16.gmra.mrb[4].mxu0 %v1263_v35  ;;  %372 = vmatmul.mubr.bf16.gmra.mrb[4].mxu1 %v1263_v35 }
 0x111   :  { %v312_v47 = vpop.f32.mrb[0].mxu0  ;;  %v363_v48 = vpop.f32.mrb[0].mxu1 }
 0x112   :  { %v313_v49 = vadd.f32 %v312_v47, %v91_v43  ;;  %v364_v50 = vadd.f32 %v363_v48, %v99_v44  ;;  %v314_v51 = vpop.f32.mrb[1].mxu0  ;;  %v365_v52 = vpop.f32.mrb[1].mxu1 }
 0x113   :  { %v315_v53 = vadd.f32 %v314_v51, %v95_v45  ;;  %v366_v54 = vadd.f32 %v365_v52, %v103_v46  ;;  %v316_v55 = vpop.f32.mrb[2].mxu0  ;;  %v367_v56 = vpop.f32.mrb[2].mxu1 }
 0x114   :  { %v317_v58 = vadd.f32 %v316_v55, %v91_v43  ;;  %v368_v59 = vadd.f32 %v367_v56, %v99_v44  ;;  %v318_v60 = vpop.f32.mrb[3].mxu0  ;;  %v369_v61 = vpop.f32.mrb[3].mxu1 }
 0x115   :  { %v1169_v62 = vpack.c.bf16 %v315_v53, %v313_v49  ;;  %v1170_v63 = vpack.c.bf16 %v366_v54, %v364_v50  ;;  %v319_v0 = vadd.f32 %v318_v60, %v95_v45  ;;  %v370_v1 = vadd.f32 %v369_v61, %v103_v46 }
 0x117   :  { %396 = vst [vmem:[#allocation2] sm:$0xff] %v1169_v62  ;;  %400 = vst.msk [vmem:[#allocation2 + $0x8] sm:$0xff] %vm1563_vm2, %v1170_v63  ;;  %v1171_v2 = vpack.c.bf16 %v319_v0, %v317_v58  ;;  %v1172_v3 = vpack.c.bf16 %v370_v1, %v368_v59 }
 0x119   :  { %418 = vst [vmem:[#allocation2 + $0x10] sm:$0xff] %v1171_v2  ;;  %419 = vst.msk [vmem:[#allocation2 + $0x18] sm:$0xff] %vm1563_vm2, %v1172_v3  ;;  %v322_v4 = vpop.f32.mrb[4].mxu0  ;;  %v373_v5 = vpop.f32.mrb[4].mxu1 }
 0x11a   :  { %v323_v6 = vadd.f32 %v322_v4, %v91_v43  ;;  %v374_v7 = vadd.f32 %v373_v5, %v99_v44  ;;  %v324_v8 = vpop.f32.mrb[5].mxu0  ;;  %v375_v9 = vpop.f32.mrb[5].mxu1 }
 0x11b   :  { %v325_v10 = vadd.f32 %v324_v8, %v95_v45  ;;  %v376_v11 = vadd.f32 %v375_v9, %v103_v46  ;;  %v326_v12 = vpop.f32.mrb[6].mxu0  ;;  %v377_v13 = vpop.f32.mrb[6].mxu1 }
 0x11c   :  { %v327_v14 = vpop.f32.mrb[7].mxu0  ;;  %v378_v15 = vpop.f32.mrb[7].mxu1 }
 0x11d   :  { %v1173_v16 = vpack.c.bf16 %v325_v10, %v323_v6  ;;  %v1174_v17 = vpack.c.bf16 %v376_v11, %v374_v7 }
 0x11f   :  { %437 = vst [vmem:[#allocation2 + $0x20] sm:$0xff] %v1173_v16  ;;  %438 = vst.msk [vmem:[#allocation2 + $0x28] sm:$0xff] %vm1563_vm2, %v1174_v17 }
 0x120 LB: > { %v1264_v18 = vld [vmem:[%s1829_s5 + $0x4] ss:$12 sps:$4 sm:$0xff]   ;;  %v1266_v19 = vld [vmem:[%s1829_s5] ss:$12 sps:$4 sm:$0xff]   ;;  %v1267_v20 = vld [vmem:[%s1829_s5 + $0x1c] ss:$12 sps:$4 sm:$0xff]   ;;  %s1402_s2 = sphi %s1573_s2, %s444_s2  }
 0x121   : > { %894 = vmatprep.subr.bf16.mxu0 %v1264_v18  ;;  %v1269_v21 = vld [vmem:[%s1829_s5 + $0x18] ss:$12 sps:$4 sm:$0xff]   ;;  %v1270_v22 = vld [vmem:[%s1829_s5 + $0x34] ss:$12 sps:$4 sm:$0xff]   ;;  %v1272_v23 = vld [vmem:[%s1829_s5 + $0x30] ss:$12 sps:$4 sm:$0xff]  }
 0x122   : > { %895 = vmatpush1.bf16.msra.mxu0 %v1266_v19  ;;  %v1273_v24 = vld [vmem:[%s1829_s5 + $0x4c] ss:$12 sps:$4 sm:$0xff]   ;;  %s1600_s9 = sshll.u32 %s1402_s2, 3  ;;  %v1275_v25 = vld [vmem:[%s1829_s5 + $0x48] ss:$12 sps:$4 sm:$0xff]   ;;  %vm506_vm3 = vcmask 1040384  }
 0x123   : > { %896 = vmatprep.subr.bf16.mxu0 %v1267_v20  ;;  %v1276_v26 = vld [vmem:[%s1829_s5 + $0x64] ss:$12 sps:$4 sm:$0xff]   ;;  %s448_s14 = sadd.s32 1, %s1600_s9  ;;  %v1278_v27 = vld [vmem:[%s1829_s5 + $0x60] ss:$12 sps:$4 sm:$0xff]   ;;  %s1613_s17 = sld [smem:[#allocation6 + %s1600_s9]] }
 0x124   : > { %s451_s18 = sadd.s32 2, %s1600_s9  ;;  %v1279_v28 = vld [vmem:[%s1829_s5 + $0x7c] ss:$12 sps:$4 sm:$0xff]   ;;  %s1619_s3 = sld [smem:[#allocation3 + %s448_s14]]  ;;  %v1281_v30 = vld [vmem:[%s1829_s5 + $0x78] ss:$12 sps:$4 sm:$0xff]  }
 0x125   : > { %v1299_v29 = vld [vmem:[%s1829_s5 + $0xc8] ss:$12 sps:$4 sm:$0xff]   ;;  %s1624_s22 = sld [smem:[#allocation6 + %s448_s14]]  ;;  %s454_s23 = sadd.s32 3, %s1600_s9  ;;  %v1304_v33 = vld [vmem:[%s1829_s5 + $0xe0] ss:$12 sps:$4 sm:$0xff]  }
 0x126   : > { %897 = vmatpush1.bf16.msra.mxu0 %v1269_v21  ;;  %v1301_v31 = vld [vmem:[%s1829_s5 + $0x8] ss:$12 sps:$4 sm:$0xff]   ;;  %1176 = vmatprep.subr.bf16.mxu1 %v1299_v29  ;;  %s1636_s0 = sld [smem:[#allocation3 + %s451_s18]]  ;;  %s457_s1 = sadd.s32 4, %s1600_s9  ;;  %v1284_v34 = vld [vmem:[%s1829_s5 + $0x90] ss:$12 sps:$4 sm:$0xff]  }
 0x127   : > { %898 = vmatprep.subr.bf16.mxu0 %v1270_v22  ;;  %v1282_v32 = vld [vmem:[%s1829_s5 + $0x94] ss:$12 sps:$4 sm:$0xff]   ;;  %1177 = vmatpush3.bf16.msra.mxu1 %v1301_v31  ;;  %s1642_s8 = sld [smem:[#allocation6 + %s451_s18]]  ;;  %s460_s16 = sadd.s32 5, %s1600_s9  ;;  %v1285_v36 = vld [vmem:[%s1829_s5 + $0xac] ss:$12 sps:$4 sm:$0xff]  }
 0x128   : > { %s1644_s10 = sld [smem:[#allocation3 + %s454_s23]]  ;;  %1178 = vmatprep.subr.bf16.mxu1 %v1304_v33  ;;  %v1306_v35 = vld [vmem:[%s1829_s5 + $0x20] ss:$12 sps:$4 sm:$0xff]   ;;  %s463_s21 = sadd.s32 6, %s1600_s9  ;;  %v1309_v37 = vld [vmem:[%s1829_s5 + $0xf8] ss:$12 sps:$4 sm:$0xff]  }
 0x129   : > { %s1652_s15 = sld [smem:[#allocation6 + %s454_s23]]  ;;  %s466_s26 = sadd.s32 7, %s1600_s9  ;;  %v1311_v38 = vld [vmem:[%s1829_s5 + $0x38] ss:$12 sps:$4 sm:$0xff]   ;;  %v1287_v39 = vld [vmem:[%s1829_s5 + $0xa8] ss:$12 sps:$4 sm:$0xff]  }
 0x12a   : > { %899 = vmatpush1.bf16.msra.mxu0 %v1272_v23  ;;  %s1658_s18 = sld [smem:[#allocation3 + %s457_s1]]  ;;  %vm508_vm4 = vcmask 1041408   ;;  %v1314_v40 = vld [vmem:[%s1829_s5 + $0x110] ss:$12 sps:$4 sm:$0xff]   ;;  %vm510_vm5 = vcmask 1042432   ;;  %vm513_vm6 = vcmask 1044480  }
 0x12b   : > { %900 = vmatprep.subr.bf16.mxu0 %v1273_v24  ;;  %1179 = vmatpush3.bf16.msra.mxu1 %v1306_v35  ;;  %s1664_s25 = sld [smem:[#allocation6 + %s457_s1]]  ;;  %v1316_v41 = vld [vmem:[%s1829_s5 + $0x50] ss:$12 sps:$4 sm:$0xff]   ;;  %v1290_v43 = vld [vmem:[%s1829_s5 + $0xc0] ss:$12 sps:$4 sm:$0xff]   ;;  %s521_s20 = scalar_lea.vmem [#allocation8], %s1624_s22 }
 0x12c   : > { %s1670_s28 = sld [smem:[#allocation3 + %s460_s16]]  ;;  %1180 = vmatprep.subr.bf16.mxu1 %v1309_v37  ;;  %v1288_v42 = vld [vmem:[%s1829_s5 + $0xc4] ss:$12 sps:$4 sm:$0xff]   ;;  %v1319_v44 = vld [vmem:[%s1829_s5 + $0x128] ss:$12 sps:$4 sm:$0xff]   ;;  %vm515_vm7 = vcmask 1045504  }
 0x12d   : > { %s1675_s7 = sld [smem:[#allocation6 + %s460_s16]]  ;;  %v1291_v45 = vld [vmem:[%s1829_s5 + $0xdc] ss:$12 sps:$4 sm:$0xff]   ;;  %s519_s16 = scalar_lea.vmem [#allocation8], %s1613_s17  ;;  %v522_v48 = vld [vmem:[%s521_s20] sm:$0x1] }
 0x12e   : > { %901 = vmatpush1.bf16.msra.mxu0 %v1275_v25  ;;  %s1677_s11 = sld [smem:[#allocation6 + %s463_s21]]  ;;  %v1321_v46 = vld [vmem:[%s1829_s5 + $0x68] ss:$12 sps:$4 sm:$0xff]   ;;  %v520_v47 = vld [vmem:[%s519_s16] sm:$0x1]  ;;  %v536_v50 = vrot.slane %v522_v48, 7 }
 0x12f   : > { %902 = vmatprep.subr.bf16.mxu0 %v1276_v26  ;;  %s1682_s13 = sld [smem:[#allocation6 + %s466_s26]]  ;;  %1181 = vmatpush3.bf16.msra.mxu1 %v1311_v38  ;;  %v1293_v51 = vld [vmem:[%s1829_s5 + $0xd8] ss:$12 sps:$4 sm:$0xff]   ;;  %s525_s24 = scalar_lea.vmem [#allocation8], %s1652_s15  ;;  %v1294_v54 = vld [vmem:[%s1829_s5 + $0xf4] ss:$12 sps:$4 sm:$0xff]  }
 0x130   : > { %1182 = vmatprep.subr.bf16.mxu1 %v1314_v40  ;;  %s1699_s1 = sld [smem:[#allocation3 + %s463_s21]]  ;;  %s523_s21 = scalar_lea.vmem [#allocation8], %s1642_s8  ;;  %v526_v52 = vld [vmem:[%s525_s24] sm:$0x1]  ;;  %v556_v58 = vsel %vm506_vm3, %v520_v47, %v536_v50  ;;  %vm517_vm8 = vcmask 1046528   ;;  %vm1028_vm9 = vcmask 523264  }
 0x131   : > { %s1701_s12 = sld [smem:[#allocation3 + %s466_s26]]  ;;  %v524_v49 = vld [vmem:[%s523_s21] sm:$0x1]  ;;  %s527_s23 = scalar_lea.vmem [#allocation8], %s1664_s25  ;;  %v542_v60 = vrot.slane %v526_v52, 5 }
 0x132   : > { %903 = vmatpush1.bf16.msra.mxu0 %v1278_v27  ;;  %v528_v53 = vld [vmem:[%s527_s23] sm:$0x1]  ;;  %v539_v57 = vrot.slane %v524_v49, 6  ;;  %s1723_s15 = sld [smem:[#allocation3 + %s1600_s9]]  ;;  %v1296_v2 = vld [vmem:[%s1829_s5 + $0xf0] ss:$12 sps:$4 sm:$0xff]  }
 0x133   : > { %904 = vmatprep.subr.bf16.mxu0 %v1279_v28  ;;  %1183 = vmatpush3.bf16.msra.mxu1 %v1316_v41  ;;  %s529_s22 = scalar_lea.vmem [#allocation8], %s1675_s7  ;;  %v545_v61 = vrot.slane %v528_v53, 4  ;;  %v1322_v4 = vld [vmem:[%s1829_s5 + $0x140] ss:$12 sps:$4 sm:$0xff]   ;;  %s471_s19 = scalar_lea.vmem [#allocation8], %s1619_s3 }
 0x134   : > { %1184 = vmatprep.subr.bf16.mxu1 %v1319_v44  ;;  %v530_v55 = vld [vmem:[%s529_s22] sm:$0x1]  ;;  %s531_s29 = scalar_lea.vmem [#allocation8], %s1677_s11  ;;  %v557_v1 = vsel %vm508_vm4, %v556_v58, %v539_v57  ;;  %v1297_v5 = vld [vmem:[%s1829_s5 + $0x10c] ss:$12 sps:$4 sm:$0xff]   ;;  %s473_s16 = scalar_lea.vmem [#allocation8], %s1636_s0 }
 0x135   : > { %v532_v56 = vld [vmem:[%s531_s29] sm:$0x1]  ;;  %s533_s8 = scalar_lea.vmem [#allocation8], %s1682_s13  ;;  %v548_v62 = vrot.slane %v530_v55, 3  ;;  %v558_v3 = vsel %vm510_vm5, %v557_v1, %v542_v60  ;;  %s475_s20 = scalar_lea.vmem [#allocation8], %s1644_s10 }
 0x136   : > { %905 = vmatpush1.bf16.msra.mxu0 %v1281_v30  ;;  %v534_v59 = vld [vmem:[%s533_s8] sm:$0x1]  ;;  %v551_v63 = vrot.slane %v532_v56, 2  ;;  %v559_v6 = vsel %vm397_vm0, %v558_v3, %v545_v61  ;;  %s477_s21 = scalar_lea.vmem [#allocation8], %s1658_s18  ;;  %s479_s26 = scalar_lea.vmem [#allocation8], %s1670_s28 }
 0x137   : > { %906 = vmatprep.subr.bf16.mxu0 %v1282_v32  ;;  %1185 = vmatpush3.bf16.msra.mxu1 %v1321_v46  ;;  %v554_v0 = vrot.slane %v534_v59, 1  ;;  %v472_v7 = vld [vmem:[%s471_s19] sm:$0x1]  ;;  %v560_v9 = vsel %vm513_vm6, %v559_v6, %v548_v62  ;;  %s481_s4 = scalar_lea.vmem [#allocation8], %s1699_s1  ;;  %v1300_v16 = vld [vmem:[%s1829_s5 + $0x108] ss:$12 sps:$4 sm:$0xff]  }
 0x138   : > { %v474_v8 = vld [vmem:[%s473_s16] sm:$0x1]  ;;  %1186 = vmatprep.subr.bf16.mxu1 %v1322_v4  ;;  %v561_v12 = vsel %vm515_vm7, %v560_v9, %v551_v63  ;;  %v486_v15 = vrot.slane %v472_v7, 7  ;;  %s483_s10 = scalar_lea.vmem [#allocation8], %s1701_s12  ;;  %v1302_v22 = vld [vmem:[%s1829_s5 + $0x124] ss:$12 sps:$4 sm:$0xff]  }
 0x139   : > { %v476_v10 = vld [vmem:[%s475_s20] sm:$0x1]  ;;  %v1748_v17 = vsel %vm517_vm8, %v561_v12, %v554_v0  ;;  %v489_v19 = vrot.slane %v474_v8, 6  ;;  %s469_s28 = scalar_lea.vmem [#allocation8], %s1723_s15  ;;  %v1324_v30 = vld [vmem:[%s1829_s5 + $0x158] ss:$12 sps:$4 sm:$0xff]  }
 0x13a   : > { %907 = vmatpush1.bf16.msra.mxu0 %v1284_v34  ;;  %v478_v11 = vld [vmem:[%s477_s21] sm:$0x1]  ;;  %v492_v20 = vrot.slane %v476_v10, 5  ;;  %v573_v23 = vpack.c.bf16 %v1748_v17, %v1748_v17  ;;  %v1325_v32 = vld [vmem:[%s1829_s5 + $0x98] ss:$12 sps:$4 sm:$0xff]   ;;  %s1408_s16 = smov 64  }
 0x13b   : > { %908 = vmatprep.subr.bf16.mxu0 %v1285_v36  ;;  %v480_v13 = vld [vmem:[%s479_s26] sm:$0x1]  ;;  %v495_v21 = vrot.slane %v478_v11, 4  ;;  %v1326_v34 = vld [vmem:[%s1829_s5 + $0x170] ss:$12 sps:$4 sm:$0xff]   ;;  %s1175_s24 = sshll.u32 %s1402_s2, 4 }
 0x13c   : > { %v482_v14 = vld [vmem:[%s481_s4] sm:$0x1]  ;;  %v498_v24 = vrot.slane %v480_v13, 3  ;;  %926 = vmatprep.mubr.bf16.mxu0 %v573_v23  ;;  %967 = vmatprep.mubr.bf16.mxu1 %v573_v23  ;;  %v1307_v37 = vld [vmem:[%s1829_s5 + $0x13c] ss:$12 sps:$4 sm:$0xff]   ;;  %s1030_s1 = scalar_lea.vmem [#allocation8], %s1600_s9 }
 0x13d   : > { %v484_v18 = vld [vmem:[%s483_s10] sm:$0x1]  ;;  %v501_v25 = vrot.slane %v482_v14, 2  ;;  %v1327_v40 = vld [vmem:[%s1829_s5 + $0xb0] ss:$12 sps:$4 sm:$0xff]   ;;  %s444_s2 = sadd.s32 1, %s1402_s2  }
 0x13e   : > { %909 = vmatpush1.bf16.msra.mxu0 %v1287_v39  ;;  %v504_v26 = vrot.slane %v484_v18, 1  ;;  %v470_v27 = vld [vmem:[%s469_s28] sm:$0x1]  ;;  %v1317_v46 = vld [vmem:[%s1829_s5 + $0x16c] ss:$12 sps:$4 sm:$0xff]   ;;  %s565_s28 = scalar_lea.vmem [#allocation2], %s1175_s24 }
 0x13f   : > { %910 = vmatprep.subr.bf16.mxu0 %v1288_v42  ;;  %v1323_v28 = vld [vmem:[%s1829_s5 + $0x80] ss:$12 sps:$4 sm:$0xff]   ;;  %v507_v29 = vsel %vm506_vm3, %v470_v27, %v486_v15  ;;  %v1310_v42 = vld [vmem:[%s1829_s5 + $0x138] ss:$12 sps:$4 sm:$0xff]   ;;  %v1320_v47 = vld [vmem:[%s1829_s5 + $0x168] ss:$12 sps:$4 sm:$0xff]  }
 0x140   : > { %v509_v31 = vsel %vm508_vm4, %v507_v29, %v489_v19  ;;  %1187 = vmatpush3.bf16.msra.mxu1 %v1323_v28  ;;  %v1305_v35 = vld [vmem:[%s1829_s5 + $0x120] ss:$12 sps:$4 sm:$0xff]   ;;  %p441_p10 = scmp.ge.s32.totalorder %s444_s2, 3  }
 0x141   : > { %v511_v33 = vsel %vm510_vm5, %v509_v31, %v492_v20  ;;  %1188 = vmatprep.subr.bf16.mxu1 %v1324_v30  ;;  %v566_v53 = vld [vmem:[%s565_s28] sm:$0xff]  ;;  %v567_v0 = vld [vmem:[%s565_s28 + $0x8] sm:$0xff]  ;;  %s1409_s23 = smov (%p441_p10), [#allocation8]  }
 0x142   : > { %911 = vmatpush1.bf16.msra.mxu0 %v1290_v43  ;;  %v512_v36 = vsel %vm397_vm0, %v511_v33, %v495_v21  ;;  %v1312_v43 = vld [vmem:[%s1829_s5 + $0x154] ss:$12 sps:$4 sm:$0xff]   ;;  %v569_v55 = vunpack.c.h.bf16 %v566_v53  ;;  %v570_v1 = vunpack.c.l.bf16 %v567_v0  ;;  %v571_v19 = vunpack.c.h.bf16 %v567_v0  ;;  %s1037_s12 = sshll.u32 (%p441_p10), %s1409_s23, 4  ;;  %s1038_s12 = int_to_ptr.vmem [resolvable:$true] %s1037_s12 }
 0x143   : > { %912 = vmatprep.subr.bf16.mxu0 %v1291_v45  ;;  %v514_v38 = vsel %vm513_vm6, %v512_v36, %v498_v24  ;;  %v1315_v45 = vld [vmem:[%s1829_s5 + $0x150] ss:$12 sps:$4 sm:$0xff]   ;;  %s1368_s17 = scalar_lea.vmem (%p441_p10), %s1038_s12, 512  ;;  %p1373_p12 = scmp.lt.s32.totalorder (%p441_p10), %s1038_s12, %s1038_s12 }
 0x144   : > { %v516_v39 = vsel %vm515_vm7, %v514_v38, %v501_v25  ;;  %1189 = vmatpush3.bf16.msra.mxu1 %v1325_v32  ;;  %p1369_p11 = scmp.ne.s32.totalorder (%p441_p10), %s1038_s12, %s1368_s17  ;;  %p1374_p13 = scmp.lt.s32.totalorder (%p441_p10), %s1368_s17, %s1368_s17 }
 0x145   : > { %v518_v41 = vsel %vm517_vm8, %v516_v39, %v504_v26  ;;  %1190 = vmatprep.subr.bf16.mxu1 %v1326_v34 }
 0x146   : > { %913 = vmatpush1.bf16.msra.mxu0 %v1293_v51  ;;  %996 = vrot.lane.b32.xlu0 %v518_v41, %s1408_s16  ;;  %v572_v44 = vpack.c.bf16 %v518_v41, %v518_v41  ;;  %p1375_p0 = por (%p441_p10), %p1374_p13, %p1373_p12 }
 0x147   : > { %914 = vmatprep.subr.bf16.mxu0 %v1294_v54  ;;  %v568_v54 = vunpack.c.l.bf16 %v566_v53 }
 0x148   : > { %1191 = vmatpush3.bf16.msra.mxu1 %v1327_v40  ;;  %p1376_p1 = pnand (%p441_p10), %p1375_p0, %p1369_p11 }
 0x14a   : > { %915 = vmatpush1.bf16.msra.mxu0 %v1296_v2 }
 0x14b   : > { %916 = vmatprep.subr.bf16.mxu0 %v1297_v5  ;;  %968 = vmatmul.mubr.bf16.vlgmr.msra.gmra.mrb[0].mxu1 %v572_v44 }
 0x14e   : > { %917 = vmatpush1.bf16.msra.mxu0 %v1300_v16 }
 0x14f   : > { %918 = vmatprep.subr.bf16.mxu0 %v1302_v22 }
 0x152   : > { %919 = vmatpush1.bf16.msra.mxu0 %v1305_v35 }
 0x153   : > { %920 = vmatprep.subr.bf16.mxu0 %v1307_v37 }
 0x156   : > { %921 = vmatpush1.bf16.msra.mxu0 %v1310_v42 }
 0x157   : > { %922 = vmatprep.subr.bf16.mxu0 %v1312_v43 }
 0x15a   : > { %923 = vmatpush1.bf16.msra.mxu0 %v1315_v45 }
 0x15b   : > { %924 = vmatprep.subr.bf16.mxu0 %v1317_v46 }
 0x15e   : > { %925 = vmatpush1.bf16.msra.mxu0 %v1320_v47 }
 0x161   : > { %927 = vmatmul.mubr.bf16.vlgmr.msra.gmra.mrb[0].mxu0 %v572_v44 }
 0x1b8   : > { %v997_v8 = vpop.permute.xlu0 %996 }
 0x21e   : > { %v1192_v48 = vpop.f32.mrb[0].mxu1 }
 0x21f   : > { %v1193_v49 = vpop.f32.mrb[1].mxu1 }
 0x220   : > { %v1194_v50 = vadd.f32 %v1193_v49, %v1192_v48  ;;  %v1195_v51 = vpop.f32.mrb[2].mxu1 }
 0x221   : > { %v1196_v52 = vpop.f32.mrb[3].mxu1 }
 0x222   : > { %v970_v2 = vadd.f32 %v1194_v50, %v570_v1 }
 0x224   : > { %v1168_v20 = vmul.f32 -1.442695, %v970_v2 }
 0x234   : > { %v928_v56 = vpop.f32.mrb[0].mxu0 }
 0x235   : > { %v929_v57 = vadd.f32 %v928_v56, %v568_v54  ;;  %v930_v58 = vpop.f32.mrb[1].mxu0 }
 0x236   : > { %v931_v59 = vadd.f32 %v930_v58, %v569_v55  ;;  %v932_v60 = vpop.f32.mrb[2].mxu0 }
 0x237   : > { %v1166_v61 = vmul.f32 -1.442695, %v929_v57  ;;  %v933_v62 = vpop.f32.mrb[3].mxu0 }
 0x238   : > { %v1167_v63 = vmul.f32 -1.442695, %v931_v59 }
 0x239   : > { %1328 = vpow2.f32 %v1166_v61 }
 0x23a   : > { %1330 = vpow2.f32 %v1167_v63 }
 0x23b   : > { %1332 = vtanh.f32 %v970_v2 }
 0x243   : > { %v1329_v3 = vpop.eup %1328 }
 0x244   : > { %v1331_v4 = vpop.eup %1330  ;;  %v978_v5 = vadd.f32 1.0, %v1329_v3 }
 0x245   : > { %v984_v6 = vadd.f32 1.0, %v1331_v4  ;;  %v1333_v7 = vpop.eup %1332 }
 0x246   : > { %1334 = vrcp.f32 %v978_v5 }
 0x247   : > { %1336 = vrcp.f32 %v984_v6 }
 0x250   : > { %v1335_v9 = vpop.eup %1334 }
 0x251   : > { %v1337_v10 = vpop.eup %1336  ;;  %v994_v11 = vmul.f32 %v1335_v9, %v1333_v7 }
 0x252   : > { %v999_v12 = vmul.f32 %v1337_v10, %v997_v8  ;;  %v1001_v13 = vmul.f32 %v1337_v10, %v1748_v17 }
 0x254   : > { %1003 = vrot.lane.b32.xlu0 %v1001_v13, %s1408_s16  ;;  %v1000_v14 = vadd.f32 %v999_v12, %v994_v11 }
 0x2c6   : > { %v1004_v15 = vpop.permute.xlu0 %1003 }
 0x2c7   : > { %v1006_v16 = vadd.f32 %v1004_v15, %v1000_v14 }
 0x2c9   : > { %1338 = vtanh.f32 %v1006_v16 }
 0x2ca   : > { %1340 = vpow2.f32 %v1168_v20 }
 0x2d3   : > { %v1339_v18 = vpop.eup %1338 }
 0x2d4   : > { %1009 = vrot.lane.b32.xlu1 %v1339_v18, %s1408_s16  ;;  %v1341_v21 = vpop.eup %1340 }
 0x2d5   : > { %v991_v22 = vadd.f32 1.0, %v1341_v21 }
 0x2d7   : > { %1342 = vrcp.f32 %v991_v22 }
 0x2d8   : > { %1014 = vrot.lane.b32.xlu1 %v571_v19, %s1408_s16 }
 0x2dc   : > { %1025 = vrot.lane.b32.xlu1 %v1006_v16, %s1408_s16 }
 0x2e1   : > { %v1343_v26 = vpop.eup %1342 }
 0x346   : > { %v1010_v17 = vpop.permute.xlu1 %1009 }
 0x347   : > { %v1012_v23 = vmul.f32 %v1335_v9, %v1010_v17 }
 0x34a   : > { %v1015_v24 = vpop.permute.xlu1 %1014 }
 0x34b   : > { %v1017_v25 = vsub.f32 %v1012_v23, %v1015_v24 }
 0x34d   : > { %v1018_v27 = vmul.f32 %v1343_v26, %v1017_v25 }
 0x34e   : > { %v1026_v30 = vpop.permute.xlu1 %1025 }
 0x34f   : > { %1020 = vrot.lane.b32.xlu0 %v1018_v27, %s1408_s16 }
 0x3bf   :  { %443 = sbr.rel (!%p441_p10) target bundleno = 288 (0x120), region = 79 }
 0x3c1   : > { %v1021_v28 = vpop.permute.xlu0 %1020 }
 0x3c2   : > { %v1023_v29 = vadd.f32 %v1021_v28, %v571_v19 }
 0x3c4   : > { %v1029_v31 = vsel %vm1028_vm9, %v1023_v29, %v1026_v30 }
 0x3c5   : > { %1031 = vst [vmem:[%s1030_s1] sm:$0xff] %v1029_v31 }
 0x3c6   :  { %1379 = shalt.err (!%p1376_p1)
}
 0x3c7   :  { %s1380_s9 = scalar_lea.hbm %s1830_s6, 512 }
 0x3c8   :  { %p1381_p2 = scmp.ne.s32.totalorder %s1830_s6, %s1380_s9  ;;  %p1384_p3 = scmp.lt.u32.totalorder %s1380_s9, %s1830_s6 }
 0x3ca   :  { %p1386_p4 = pnand %p1384_p3, %p1381_p2 }
 0x3cc   :  { %1389 = shalt.err (!%p1386_p4)
}
 0x3cd   :  { %s1410_s5 = smov 128   ;;  %s1411_s25 = smov 8  }
 0x3ce   :  { %1043 = dma.vmem_to_hbm [thread:$0]  %s1038_s12, 512, %s1830_s6, [#allocation4], %s1410_s5, %s1410_s5, %s1411_s25  }
 0x3cf   :  { %1398 = dma.done.wait [#allocation4], 512  }
 0x3d0   :  { %1399 = vsyncadd [#allocation4], 4294966784 }
 0x3d1   :  { %1047 = vsyncpa [#allocation4], 1 }
 0x3d2   :  { %1048 = vsyncpa [#allocation5], 1 }
 0x3d3   :  { %1049 = vsyncpa [#allocation7], 1 }

</bundles_post_ra>
